<compile_context>
chip_gen: v6e
topology: v6e:2x2x1
jax: 0.10.0
libtpu: 0.0.40
codegen_flags: <defaults>
</compile_context>

<pallas_src>
import functools

import jax
import jax.numpy as jnp
from jax import lax
from jax.experimental import pallas as pl
from jax.experimental.pallas import tpu as pltpu


def _round_up(n, m):
    return ((n + m - 1) // m) * m


# ---------------------------------------------------------------------------
# Fused kernel: per (batch-tile, time-chunk) grid point
#   1) x_proj chunk = x_chunk @ W_ih^T_scaled + bias   (bf16 MXU, f32 acc)
#   2) sequential recurrence over the chunk, h carried in vregs / VMEM scratch
# ---------------------------------------------------------------------------
def _ctrnn_fused_kernel(x_ref, wih_t_ref, bias_ref, whh_t_ref, h0_ref,
                        out_ref, h_scratch, xproj_scratch,
                        *, t_chunk, alpha, oneminusalpha, unroll):
    # New batch tile (time-chunk 0) -> (re)load the initial hidden state.
    @pl.when(pl.program_id(1) == 0)
    def _():
        h_scratch[...] = h0_ref[...]

    # ---- fused per-chunk input projection ----
    t, b, ip = x_ref.shape
    x2d = x_ref[...].reshape(t * b, ip)                      # (t*b, Ip) bf16
    xp = jnp.dot(x2d, wih_t_ref[...], preferred_element_type=jnp.float32)
    xp = xp + bias_ref[...]                                  # (1, Hp) broadcast
    xproj_scratch[...] = xp.reshape(t, b, -1)                # stays in VMEM

    whh_t = whh_t_ref[...]                                   # (Hp, Hp) bf16, resident

    def step(i, h):
        pre = jnp.dot(h.astype(whh_t.dtype), whh_t,
                      preferred_element_type=jnp.float32) + xproj_scratch[i]
        # sigmoid(x) == 0.5*(tanh(0.5*x)+1): one EUP tanh on the serial path.
        h_new = h * oneminusalpha + alpha * (0.5 * (jnp.tanh(0.5 * pre) + 1.0))
        out_ref[i] = h_new.astype(out_ref.dtype)
        return h_new

    h_final = lax.fori_loop(0, t_chunk, step, h_scratch[...], unroll=unroll)
    h_scratch[...] = h_final


def ctrnn_forward(x, w_ih, b_ih, w_hh, b_hh, h0=None,
                  *, dt=None, tau=100.0, gain=1.0, t_chunk=32):
    """Pallas CTRNN forward.

    x: (S, B, I); w_ih: (H, I); b_ih: (H,); w_hh: (H, H); b_hh: (H,)
    h0: (B, H) or None (-> zeros, matching PyTorch init_hidden semantics)
    returns (output (S, B, H), hidden (B, H))
    """
    S, B, I = x.shape
    H = w_ih.shape[0]
    alpha = 1.0 if dt is None else float(dt) / float(tau)
    oma = 1.0 - alpha
    gain = float(gain)
    f32 = jnp.float32
    bf16 = jnp.bfloat16

    if h0 is None:
        h0 = jnp.zeros((B, H), dtype=f32)

    # TPU-friendly padded shapes (zero padding is mathematically inert here).
    bt = 8                              # batch tile (sublane); parallel axis on v7x
    Bp = _round_up(B, bt)
    Hp = _round_up(H, 128)              # lane-dense stores
    Ip = _round_up(I, 128)
    t_chunk = max(8, min(int(t_chunk), _round_up(S, 8)))   # avoid huge padding at small S
    Sp = _round_up(S, t_chunk)
    n_chunks = Sp // t_chunk
    n_btiles = Bp // bt
    unroll = min(8, t_chunk)            # partial unroll: bounded code size / vregs

    # One-time wrapper prep: pad, fold gain into weights + combined bias,
    # pre-transpose, cast MXU operands to bf16.
    x_p = jnp.pad(x.astype(bf16), ((0, Sp - S), (0, Bp - B), (0, Ip - I)))
    h0_p = jnp.pad(h0.astype(f32), ((0, Bp - B), (0, Hp - H)))
    wih_t_p = jnp.pad((gain * w_ih.astype(f32)).T,
                      ((0, Ip - I), (0, Hp - H))).astype(bf16)
    whh_t_p = jnp.pad((gain * w_hh.astype(f32)).T,
                      ((0, Hp - H), (0, Hp - H))).astype(bf16)
    bias_p = jnp.pad(gain * (b_ih.astype(f32) + b_hh.astype(f32)),
                     (0, Hp - H)).reshape(1, Hp)

    # Explicit VMEM budget: double-buffered blocks + scratch + headroom,
    # clamped to v7x's 64 MiB physical VMEM (also >= v5e's 16 MiB default).
    blk_bytes = (t_chunk * bt * Ip * 2        # x chunk (bf16)
                 + Ip * Hp * 2                # W_ih^T (bf16)
                 + Hp * 4                     # bias
                 + Hp * Hp * 2                # W_hh^T (bf16)
                 + bt * Hp * 4                # h0 tile
                 + t_chunk * bt * Hp * 4)     # out chunk
    scratch_bytes = bt * Hp * 4 + t_chunk * bt * Hp * 4
    vmem_limit = min(64 << 20,
                     max(16 << 20, 2 * blk_bytes + scratch_bytes + (2 << 20)))

    kernel = functools.partial(_ctrnn_fused_kernel, t_chunk=t_chunk,
                               alpha=alpha, oneminusalpha=oma, unroll=unroll)

    out_p = pl.pallas_call(
        kernel,
        out_shape=jax.ShapeDtypeStruct((Sp, Bp, Hp), f32),
        grid_spec=pltpu.PrefetchScalarGridSpec(
            num_scalar_prefetch=0,
            grid=(n_btiles, n_chunks),
            in_specs=[
                pl.BlockSpec((t_chunk, bt, Ip), lambda b, c: (c, b, 0)),  # x chunk
                pl.BlockSpec((Ip, Hp), lambda b, c: (0, 0)),              # W_ih^T (bf16)
                pl.BlockSpec((1, Hp), lambda b, c: (0, 0)),               # combined bias
                pl.BlockSpec((Hp, Hp), lambda b, c: (0, 0)),              # W_hh^T (bf16)
                pl.BlockSpec((bt, Hp), lambda b, c: (b, 0)),              # h0 tile
            ],
            out_specs=pl.BlockSpec((t_chunk, bt, Hp), lambda b, c: (c, b, 0)),
            scratch_shapes=[
                pltpu.VMEM((bt, Hp), jnp.float32),               # carried h
                pltpu.VMEM((t_chunk, bt, Hp), jnp.float32),      # x_proj chunk (never hits HBM)
            ],
        ),
        compiler_params=pltpu.CompilerParams(
            dimension_semantics=("parallel", "arbitrary"),   # batch || time-sequential
            vmem_limit_bytes=int(vmem_limit),
        ),
    )(x_p, wih_t_p, bias_p, whh_t_p, h0_p)

    out = out_p[:S, :B, :H]
    hidden = out[S - 1]            # final hidden == output[-1], exact
    return out, hidden


def ctrnn_reference(x, w_ih, b_ih, w_hh, b_hh, h0, *, dt, tau, gain):
    """Pure-JAX f32 reference mirroring the PyTorch loop."""
    alpha = 1.0 if dt is None else float(dt) / float(tau)
    oma = 1.0 - alpha

    def step(h, xt):
        pre = h @ w_hh.T + b_hh + xt @ w_ih.T + b_ih
        h_new = h * oma + alpha * jax.nn.sigmoid(gain * pre)
        return h_new, h_new

    h_last, out = jax.lax.scan(step, h0, x)
    return out, h_last


if __name__ == "__main__":
    # Small deterministic example: seq=8, batch=2, input_size=4, hidden=32
    S, B, I, H = 8, 2, 4, 32
    dt, tau, gain = 20.0, 100.0, 1.5

    key = jax.random.PRNGKey(0)
    k1, k2, k3, k4, k5 = jax.random.split(key, 5)

    # Deterministic "Linear-like" init: U(-1/sqrt(fan_in), 1/sqrt(fan_in))
    bnd_ih = 1.0 / (I ** 0.5)
    bnd_hh = 1.0 / (H ** 0.5)
    w_ih = jax.random.uniform(k1, (H, I), jnp.float32, -bnd_ih, bnd_ih)
    b_ih = jax.random.uniform(k2, (H,), jnp.float32, -bnd_ih, bnd_ih)
    w_hh = jax.random.uniform(k3, (H, H), jnp.float32, -bnd_hh, bnd_hh)
    b_hh = jax.random.uniform(k4, (H,), jnp.float32, -bnd_hh, bnd_hh)

    x = jax.random.normal(k5, (S, B, I), jnp.float32)
    h0 = jnp.zeros((B, H), jnp.float32)

    out, h_last = ctrnn_forward(x, w_ih, b_ih, w_hh, b_hh, h0,
                                dt=dt, tau=tau, gain=gain)
    out = jax.block_until_ready(out)
    h_last = jax.block_until_ready(h_last)

    # Cross-check against the pure-JAX f32 reference (kernel uses bf16 MXU
    # operands, hence the relaxed tolerance).
    ref_out, ref_h = ctrnn_reference(x, w_ih, b_ih, w_hh, b_hh, h0,
                                     dt=dt, tau=tau, gain=gain)
    assert out.shape == (S, B, H) and h_last.shape == (B, H)
    assert jnp.allclose(out, ref_out, atol=1e-2, rtol=1e-2)
    assert jnp.allclose(h_last, ref_h, atol=1e-2, rtol=1e-2)

    print("KERNEL_OK")
</pallas_src>

<mosaic_0001>
module attributes {stable_mosaic.version = 11 : i64} {
  func.func @_ctrnn_fused_kernel(%arg0: i32, %arg1: i32, %arg2: memref<8x8x128xbf16, #tpu.memory_space<vmem>>, %arg3: memref<128x128xbf16, #tpu.memory_space<vmem>>, %arg4: memref<1x128xf32, #tpu.memory_space<vmem>>, %arg5: memref<128x128xbf16, #tpu.memory_space<vmem>>, %arg6: memref<8x128xf32, #tpu.memory_space<vmem>>, %arg7: memref<8x8x128xf32, #tpu.memory_space<vmem>>, %arg8: memref<8x128xf32, #tpu.memory_space<vmem>>, %arg9: memref<8x8x128xf32, #tpu.memory_space<vmem>>) attributes {dimension_semantics = [#tpu.dimension_semantics<parallel>, #tpu.dimension_semantics<arbitrary>], iteration_bounds = array<i64: 1, 1>, scalar_prefetch = 0 : i64, scratch_operands = 2 : i64, tpu.core_type = #tpu.core_type<tc>, window_params = [{transform_indices = @transform_0, window_bounds = array<i64: 8, 8, 128>}, {pipeline_mode = #tpu.pipeline_mode<synchronous>, transform_indices = @transform_1, window_bounds = array<i64: 128, 128>}, {pipeline_mode = #tpu.pipeline_mode<synchronous>, transform_indices = @transform_2, window_bounds = array<i64: 1, 128>}, {pipeline_mode = #tpu.pipeline_mode<synchronous>, transform_indices = @transform_3, window_bounds = array<i64: 128, 128>}, {transform_indices = @transform_4, window_bounds = array<i64: 8, 128>}, {transform_indices = @transform_5, window_bounds = array<i64: 8, 8, 128>}]} {
    %c0_i32 = arith.constant 0 : i32
    %0 = arith.cmpi eq, %arg1, %c0_i32 : i32
    %1 = arith.extui %0 : i1 to i32
    %c0_i32_0 = arith.constant 0 : i32
    %2 = arith.cmpi ne, %1, %c0_i32_0 : i32
    scf.if %2 {
      %c0_97 = arith.constant 0 : index
      %c0_98 = arith.constant 0 : index
      %191 = vector.load %arg6[%c0_97, %c0_98] : memref<8x128xf32, #tpu.memory_space<vmem>>, vector<8x128xf32>
      %c0_99 = arith.constant 0 : index
      %c0_100 = arith.constant 0 : index
      %192 = vector.load %arg8[%c0_99, %c0_100] : memref<8x128xf32, #tpu.memory_space<vmem>>, vector<8x128xf32>
      tpu.vector_store %arg8[%c0_99, %c0_100], %191 {strides = array<i32>} : memref<8x128xf32, #tpu.memory_space<vmem>>, vector<8x128xf32>,
    } else {
    }
    %c0 = arith.constant 0 : index
    %c0_1 = arith.constant 0 : index
    %c0_2 = arith.constant 0 : index
    %3 = vector.load %arg2[%c0, %c0_1, %c0_2] : memref<8x8x128xbf16, #tpu.memory_space<vmem>>, vector<8x8x128xbf16>
    %4 = vector.shape_cast %3 : vector<8x8x128xbf16> to vector<64x128xbf16>
    %c0_3 = arith.constant 0 : index
    %c0_4 = arith.constant 0 : index
    %5 = vector.load %arg3[%c0_3, %c0_4] : memref<128x128xbf16, #tpu.memory_space<vmem>>, vector<128x128xbf16>
    %cst = arith.constant dense<0.000000e+00> : vector<64x128xf32>
    %6 = tpu.matmul %4, %5, %cst {dimension_numbers = #tpu.dot_dimension_numbers<[1], [0], [0], [1], [0, 0, 1, 1], [], []>} : vector<64x128xbf16>, vector<128x128xbf16>, vector<64x128xf32> -> vector<64x128xf32>
    %c0_5 = arith.constant 0 : index
    %c0_6 = arith.constant 0 : index
    %7 = vector.load %arg4[%c0_5, %c0_6] : memref<1x128xf32, #tpu.memory_space<vmem>>, vector<1x128xf32>
    %8 = vector.broadcast %7 : vector<1x128xf32> to vector<64x128xf32>
    %9 = arith.addf %6, %8 : vector<64x128xf32>
    %10 = vector.shape_cast %9 : vector<64x128xf32> to vector<8x8x128xf32>
    %c0_7 = arith.constant 0 : index
    %c0_8 = arith.constant 0 : index
    %c0_9 = arith.constant 0 : index
    %11 = vector.load %arg9[%c0_7, %c0_8, %c0_9] : memref<8x8x128xf32, #tpu.memory_space<vmem>>, vector<8x8x128xf32>
    tpu.vector_store %arg9[%c0_7, %c0_8, %c0_9], %10 {strides = array<i32>} : memref<8x8x128xf32, #tpu.memory_space<vmem>>, vector<8x8x128xf32>,
    %c0_10 = arith.constant 0 : index
    %c0_11 = arith.constant 0 : index
    %12 = vector.load %arg5[%c0_10, %c0_11] : memref<128x128xbf16, #tpu.memory_space<vmem>>, vector<128x128xbf16>
    %c0_12 = arith.constant 0 : index
    %c0_13 = arith.constant 0 : index
    %13 = vector.load %arg8[%c0_12, %c0_13] : memref<8x128xf32, #tpu.memory_space<vmem>>, vector<8x128xf32>
    %c0_i32_14 = arith.constant 0 : i32
    %14 = arith.truncf %13 : vector<8x128xf32> to vector<8x128xbf16>
    %cst_15 = arith.constant dense<0.000000e+00> : vector<8x128xf32>
    %15 = tpu.matmul %14, %12, %cst_15 {dimension_numbers = #tpu.dot_dimension_numbers<[1], [0], [0], [1], [0, 0, 1, 1], [], []>} : vector<8x128xbf16>, vector<128x128xbf16>, vector<8x128xf32> -> vector<8x128xf32>
    %16 = arith.index_cast %c0_i32_14 : i32 to index
    %c0_16 = arith.constant 0 : index
    %c0_17 = arith.constant 0 : index
    %17 = vector.load %arg9[%16, %c0_16, %c0_17] : memref<8x8x128xf32, #tpu.memory_space<vmem>>, vector<1x8x128xf32>
    %18 = vector.shape_cast %17 : vector<1x8x128xf32> to vector<8x128xf32>
    %19 = arith.addf %15, %18 : vector<8x128xf32>
    %cst_18 = arith.constant 8.000000e-01 : f32
    %20 = vector.broadcast %cst_18 : f32 to vector<8x128xf32>
    %21 = arith.mulf %13, %20 : vector<8x128xf32>
    %cst_19 = arith.constant 5.000000e-01 : f32
    %22 = vector.broadcast %cst_19 : f32 to vector<8x128xf32>
    %23 = arith.mulf %22, %19 : vector<8x128xf32>
    %24 = math.tanh %23 : vector<8x128xf32>
    %cst_20 = arith.constant 1.000000e+00 : f32
    %25 = vector.broadcast %cst_20 : f32 to vector<8x128xf32>
    %26 = arith.addf %24, %25 : vector<8x128xf32>
    %cst_21 = arith.constant 5.000000e-01 : f32
    %27 = vector.broadcast %cst_21 : f32 to vector<8x128xf32>
    %28 = arith.mulf %27, %26 : vector<8x128xf32>
    %cst_22 = arith.constant 2.000000e-01 : f32
    %29 = vector.broadcast %cst_22 : f32 to vector<8x128xf32>
    %30 = arith.mulf %29, %28 : vector<8x128xf32>
    %31 = arith.addf %21, %30 : vector<8x128xf32>
    %32 = arith.index_cast %c0_i32_14 : i32 to index
    %c0_23 = arith.constant 0 : index
    %c0_24 = arith.constant 0 : index
    %33 = vector.load %arg7[%32, %c0_23, %c0_24] : memref<8x8x128xf32, #tpu.memory_space<vmem>>, vector<1x8x128xf32>
    %34 = vector.shape_cast %33 : vector<1x8x128xf32> to vector<8x128xf32>
    %35 = vector.shape_cast %31 : vector<8x128xf32> to vector<1x8x128xf32>
    tpu.vector_store %arg7[%32, %c0_23, %c0_24], %35 {strides = array<i32>} : memref<8x8x128xf32, #tpu.memory_space<vmem>>, vector<1x8x128xf32>,
    %c1_i32 = arith.constant 1 : i32
    %36 = arith.truncf %31 : vector<8x128xf32> to vector<8x128xbf16>
    %cst_25 = arith.constant dense<0.000000e+00> : vector<8x128xf32>
    %37 = tpu.matmul %36, %12, %cst_25 {dimension_numbers = #tpu.dot_dimension_numbers<[1], [0], [0], [1], [0, 0, 1, 1], [], []>} : vector<8x128xbf16>, vector<128x128xbf16>, vector<8x128xf32> -> vector<8x128xf32>
    %38 = arith.index_cast %c1_i32 : i32 to index
    %c0_26 = arith.constant 0 : index
    %c0_27 = arith.constant 0 : index
    %39 = vector.load %arg9[%38, %c0_26, %c0_27] : memref<8x8x128xf32, #tpu.memory_space<vmem>>, vector<1x8x128xf32>
    %40 = vector.shape_cast %39 : vector<1x8x128xf32> to vector<8x128xf32>
    %41 = arith.addf %37, %40 : vector<8x128xf32>
    %cst_28 = arith.constant 8.000000e-01 : f32
    %42 = vector.broadcast %cst_28 : f32 to vector<8x128xf32>
    %43 = arith.mulf %31, %42 : vector<8x128xf32>
    %cst_29 = arith.constant 5.000000e-01 : f32
    %44 = vector.broadcast %cst_29 : f32 to vector<8x128xf32>
    %45 = arith.mulf %44, %41 : vector<8x128xf32>
    %46 = math.tanh %45 : vector<8x128xf32>
    %cst_30 = arith.constant 1.000000e+00 : f32
    %47 = vector.broadcast %cst_30 : f32 to vector<8x128xf32>
    %48 = arith.addf %46, %47 : vector<8x128xf32>
    %cst_31 = arith.constant 5.000000e-01 : f32
    %49 = vector.broadcast %cst_31 : f32 to vector<8x128xf32>
    %50 = arith.mulf %49, %48 : vector<8x128xf32>
    %cst_32 = arith.constant 2.000000e-01 : f32
    %51 = vector.broadcast %cst_32 : f32 to vector<8x128xf32>
    %52 = arith.mulf %51, %50 : vector<8x128xf32>
    %53 = arith.addf %43, %52 : vector<8x128xf32>
    %54 = arith.index_cast %c1_i32 : i32 to index
    %c0_33 = arith.constant 0 : index
    %c0_34 = arith.constant 0 : index
    %55 = vector.load %arg7[%54, %c0_33, %c0_34] : memref<8x8x128xf32, #tpu.memory_space<vmem>>, vector<1x8x128xf32>
    %56 = vector.shape_cast %55 : vector<1x8x128xf32> to vector<8x128xf32>
    %57 = vector.shape_cast %53 : vector<8x128xf32> to vector<1x8x128xf32>
    tpu.vector_store %arg7[%54, %c0_33, %c0_34], %57 {strides = array<i32>} : memref<8x8x128xf32, #tpu.memory_space<vmem>>, vector<1x8x128xf32>,
    %c2_i32 = arith.constant 2 : i32
    %58 = arith.truncf %53 : vector<8x128xf32> to vector<8x128xbf16>
    %cst_35 = arith.constant dense<0.000000e+00> : vector<8x128xf32>
    %59 = tpu.matmul %58, %12, %cst_35 {dimension_numbers = #tpu.dot_dimension_numbers<[1], [0], [0], [1], [0, 0, 1, 1], [], []>} : vector<8x128xbf16>, vector<128x128xbf16>, vector<8x128xf32> -> vector<8x128xf32>
    %60 = arith.index_cast %c2_i32 : i32 to index
    %c0_36 = arith.constant 0 : index
    %c0_37 = arith.constant 0 : index
    %61 = vector.load %arg9[%60, %c0_36, %c0_37] : memref<8x8x128xf32, #tpu.memory_space<vmem>>, vector<1x8x128xf32>
    %62 = vector.shape_cast %61 : vector<1x8x128xf32> to vector<8x128xf32>
    %63 = arith.addf %59, %62 : vector<8x128xf32>
    %cst_38 = arith.constant 8.000000e-01 : f32
    %64 = vector.broadcast %cst_38 : f32 to vector<8x128xf32>
    %65 = arith.mulf %53, %64 : vector<8x128xf32>
    %cst_39 = arith.constant 5.000000e-01 : f32
    %66 = vector.broadcast %cst_39 : f32 to vector<8x128xf32>
    %67 = arith.mulf %66, %63 : vector<8x128xf32>
    %68 = math.tanh %67 : vector<8x128xf32>
    %cst_40 = arith.constant 1.000000e+00 : f32
    %69 = vector.broadcast %cst_40 : f32 to vector<8x128xf32>
    %70 = arith.addf %68, %69 : vector<8x128xf32>
    %cst_41 = arith.constant 5.000000e-01 : f32
    %71 = vector.broadcast %cst_41 : f32 to vector<8x128xf32>
    %72 = arith.mulf %71, %70 : vector<8x128xf32>
    %cst_42 = arith.constant 2.000000e-01 : f32
    %73 = vector.broadcast %cst_42 : f32 to vector<8x128xf32>
    %74 = arith.mulf %73, %72 : vector<8x128xf32>
    %75 = arith.addf %65, %74 : vector<8x128xf32>
    %76 = arith.index_cast %c2_i32 : i32 to index
    %c0_43 = arith.constant 0 : index
    %c0_44 = arith.constant 0 : index
    %77 = vector.load %arg7[%76, %c0_43, %c0_44] : memref<8x8x128xf32, #tpu.memory_space<vmem>>, vector<1x8x128xf32>
    %78 = vector.shape_cast %77 : vector<1x8x128xf32> to vector<8x128xf32>
    %79 = vector.shape_cast %75 : vector<8x128xf32> to vector<1x8x128xf32>
    tpu.vector_store %arg7[%76, %c0_43, %c0_44], %79 {strides = array<i32>} : memref<8x8x128xf32, #tpu.memory_space<vmem>>, vector<1x8x128xf32>,
    %c3_i32 = arith.constant 3 : i32
    %80 = arith.truncf %75 : vector<8x128xf32> to vector<8x128xbf16>
    %cst_45 = arith.constant dense<0.000000e+00> : vector<8x128xf32>
    %81 = tpu.matmul %80, %12, %cst_45 {dimension_numbers = #tpu.dot_dimension_numbers<[1], [0], [0], [1], [0, 0, 1, 1], [], []>} : vector<8x128xbf16>, vector<128x128xbf16>, vector<8x128xf32> -> vector<8x128xf32>
    %82 = arith.index_cast %c3_i32 : i32 to index
    %c0_46 = arith.constant 0 : index
    %c0_47 = arith.constant 0 : index
    %83 = vector.load %arg9[%82, %c0_46, %c0_47] : memref<8x8x128xf32, #tpu.memory_space<vmem>>, vector<1x8x128xf32>
    %84 = vector.shape_cast %83 : vector<1x8x128xf32> to vector<8x128xf32>
    %85 = arith.addf %81, %84 : vector<8x128xf32>
    %cst_48 = arith.constant 8.000000e-01 : f32
    %86 = vector.broadcast %cst_48 : f32 to vector<8x128xf32>
    %87 = arith.mulf %75, %86 : vector<8x128xf32>
    %cst_49 = arith.constant 5.000000e-01 : f32
    %88 = vector.broadcast %cst_49 : f32 to vector<8x128xf32>
    %89 = arith.mulf %88, %85 : vector<8x128xf32>
    %90 = math.tanh %89 : vector<8x128xf32>
    %cst_50 = arith.constant 1.000000e+00 : f32
    %91 = vector.broadcast %cst_50 : f32 to vector<8x128xf32>
    %92 = arith.addf %90, %91 : vector<8x128xf32>
    %cst_51 = arith.constant 5.000000e-01 : f32
    %93 = vector.broadcast %cst_51 : f32 to vector<8x128xf32>
    %94 = arith.mulf %93, %92 : vector<8x128xf32>
    %cst_52 = arith.constant 2.000000e-01 : f32
    %95 = vector.broadcast %cst_52 : f32 to vector<8x128xf32>
    %96 = arith.mulf %95, %94 : vector<8x128xf32>
    %97 = arith.addf %87, %96 : vector<8x128xf32>
    %98 = arith.index_cast %c3_i32 : i32 to index
    %c0_53 = arith.constant 0 : index
    %c0_54 = arith.constant 0 : index
    %99 = vector.load %arg7[%98, %c0_53, %c0_54] : memref<8x8x128xf32, #tpu.memory_space<vmem>>, vector<1x8x128xf32>
    %100 = vector.shape_cast %99 : vector<1x8x128xf32> to vector<8x128xf32>
    %101 = vector.shape_cast %97 : vector<8x128xf32> to vector<1x8x128xf32>
    tpu.vector_store %arg7[%98, %c0_53, %c0_54], %101 {strides = array<i32>} : memref<8x8x128xf32, #tpu.memory_space<vmem>>, vector<1x8x128xf32>,
    %c4_i32 = arith.constant 4 : i32
    %102 = arith.truncf %97 : vector<8x128xf32> to vector<8x128xbf16>
    %cst_55 = arith.constant dense<0.000000e+00> : vector<8x128xf32>
    %103 = tpu.matmul %102, %12, %cst_55 {dimension_numbers = #tpu.dot_dimension_numbers<[1], [0], [0], [1], [0, 0, 1, 1], [], []>} : vector<8x128xbf16>, vector<128x128xbf16>, vector<8x128xf32> -> vector<8x128xf32>
    %104 = arith.index_cast %c4_i32 : i32 to index
    %c0_56 = arith.constant 0 : index
    %c0_57 = arith.constant 0 : index
    %105 = vector.load %arg9[%104, %c0_56, %c0_57] : memref<8x8x128xf32, #tpu.memory_space<vmem>>, vector<1x8x128xf32>
    %106 = vector.shape_cast %105 : vector<1x8x128xf32> to vector<8x128xf32>
    %107 = arith.addf %103, %106 : vector<8x128xf32>
    %cst_58 = arith.constant 8.000000e-01 : f32
    %108 = vector.broadcast %cst_58 : f32 to vector<8x128xf32>
    %109 = arith.mulf %97, %108 : vector<8x128xf32>
    %cst_59 = arith.constant 5.000000e-01 : f32
    %110 = vector.broadcast %cst_59 : f32 to vector<8x128xf32>
    %111 = arith.mulf %110, %107 : vector<8x128xf32>
    %112 = math.tanh %111 : vector<8x128xf32>
    %cst_60 = arith.constant 1.000000e+00 : f32
    %113 = vector.broadcast %cst_60 : f32 to vector<8x128xf32>
    %114 = arith.addf %112, %113 : vector<8x128xf32>
    %cst_61 = arith.constant 5.000000e-01 : f32
    %115 = vector.broadcast %cst_61 : f32 to vector<8x128xf32>
    %116 = arith.mulf %115, %114 : vector<8x128xf32>
    %cst_62 = arith.constant 2.000000e-01 : f32
    %117 = vector.broadcast %cst_62 : f32 to vector<8x128xf32>
    %118 = arith.mulf %117, %116 : vector<8x128xf32>
    %119 = arith.addf %109, %118 : vector<8x128xf32>
    %120 = arith.index_cast %c4_i32 : i32 to index
    %c0_63 = arith.constant 0 : index
    %c0_64 = arith.constant 0 : index
    %121 = vector.load %arg7[%120, %c0_63, %c0_64] : memref<8x8x128xf32, #tpu.memory_space<vmem>>, vector<1x8x128xf32>
    %122 = vector.shape_cast %121 : vector<1x8x128xf32> to vector<8x128xf32>
    %123 = vector.shape_cast %119 : vector<8x128xf32> to vector<1x8x128xf32>
    tpu.vector_store %arg7[%120, %c0_63, %c0_64], %123 {strides = array<i32>} : memref<8x8x128xf32, #tpu.memory_space<vmem>>, vector<1x8x128xf32>,
    %c5_i32 = arith.constant 5 : i32
    %124 = arith.truncf %119 : vector<8x128xf32> to vector<8x128xbf16>
    %cst_65 = arith.constant dense<0.000000e+00> : vector<8x128xf32>
    %125 = tpu.matmul %124, %12, %cst_65 {dimension_numbers = #tpu.dot_dimension_numbers<[1], [0], [0], [1], [0, 0, 1, 1], [], []>} : vector<8x128xbf16>, vector<128x128xbf16>, vector<8x128xf32> -> vector<8x128xf32>
    %126 = arith.index_cast %c5_i32 : i32 to index
    %c0_66 = arith.constant 0 : index
    %c0_67 = arith.constant 0 : index
    %127 = vector.load %arg9[%126, %c0_66, %c0_67] : memref<8x8x128xf32, #tpu.memory_space<vmem>>, vector<1x8x128xf32>
    %128 = vector.shape_cast %127 : vector<1x8x128xf32> to vector<8x128xf32>
    %129 = arith.addf %125, %128 : vector<8x128xf32>
    %cst_68 = arith.constant 8.000000e-01 : f32
    %130 = vector.broadcast %cst_68 : f32 to vector<8x128xf32>
    %131 = arith.mulf %119, %130 : vector<8x128xf32>
    %cst_69 = arith.constant 5.000000e-01 : f32
    %132 = vector.broadcast %cst_69 : f32 to vector<8x128xf32>
    %133 = arith.mulf %132, %129 : vector<8x128xf32>
    %134 = math.tanh %133 : vector<8x128xf32>
    %cst_70 = arith.constant 1.000000e+00 : f32
    %135 = vector.broadcast %cst_70 : f32 to vector<8x128xf32>
    %136 = arith.addf %134, %135 : vector<8x128xf32>
    %cst_71 = arith.constant 5.000000e-01 : f32
    %137 = vector.broadcast %cst_71 : f32 to vector<8x128xf32>
    %138 = arith.mulf %137, %136 : vector<8x128xf32>
    %cst_72 = arith.constant 2.000000e-01 : f32
    %139 = vector.broadcast %cst_72 : f32 to vector<8x128xf32>
    %140 = arith.mulf %139, %138 : vector<8x128xf32>
    %141 = arith.addf %131, %140 : vector<8x128xf32>
    %142 = arith.index_cast %c5_i32 : i32 to index
    %c0_73 = arith.constant 0 : index
    %c0_74 = arith.constant 0 : index
    %143 = vector.load %arg7[%142, %c0_73, %c0_74] : memref<8x8x128xf32, #tpu.memory_space<vmem>>, vector<1x8x128xf32>
    %144 = vector.shape_cast %143 : vector<1x8x128xf32> to vector<8x128xf32>
    %145 = vector.shape_cast %141 : vector<8x128xf32> to vector<1x8x128xf32>
    tpu.vector_store %arg7[%142, %c0_73, %c0_74], %145 {strides = array<i32>} : memref<8x8x128xf32, #tpu.memory_space<vmem>>, vector<1x8x128xf32>,
    %c6_i32 = arith.constant 6 : i32
    %146 = arith.truncf %141 : vector<8x128xf32> to vector<8x128xbf16>
    %cst_75 = arith.constant dense<0.000000e+00> : vector<8x128xf32>
    %147 = tpu.matmul %146, %12, %cst_75 {dimension_numbers = #tpu.dot_dimension_numbers<[1], [0], [0], [1], [0, 0, 1, 1], [], []>} : vector<8x128xbf16>, vector<128x128xbf16>, vector<8x128xf32> -> vector<8x128xf32>
    %148 = arith.index_cast %c6_i32 : i32 to index
    %c0_76 = arith.constant 0 : index
    %c0_77 = arith.constant 0 : index
    %149 = vector.load %arg9[%148, %c0_76, %c0_77] : memref<8x8x128xf32, #tpu.memory_space<vmem>>, vector<1x8x128xf32>
    %150 = vector.shape_cast %149 : vector<1x8x128xf32> to vector<8x128xf32>
    %151 = arith.addf %147, %150 : vector<8x128xf32>
    %cst_78 = arith.constant 8.000000e-01 : f32
    %152 = vector.broadcast %cst_78 : f32 to vector<8x128xf32>
    %153 = arith.mulf %141, %152 : vector<8x128xf32>
    %cst_79 = arith.constant 5.000000e-01 : f32
    %154 = vector.broadcast %cst_79 : f32 to vector<8x128xf32>
    %155 = arith.mulf %154, %151 : vector<8x128xf32>
    %156 = math.tanh %155 : vector<8x128xf32>
    %cst_80 = arith.constant 1.000000e+00 : f32
    %157 = vector.broadcast %cst_80 : f32 to vector<8x128xf32>
    %158 = arith.addf %156, %157 : vector<8x128xf32>
    %cst_81 = arith.constant 5.000000e-01 : f32
    %159 = vector.broadcast %cst_81 : f32 to vector<8x128xf32>
    %160 = arith.mulf %159, %158 : vector<8x128xf32>
    %cst_82 = arith.constant 2.000000e-01 : f32
    %161 = vector.broadcast %cst_82 : f32 to vector<8x128xf32>
    %162 = arith.mulf %161, %160 : vector<8x128xf32>
    %163 = arith.addf %153, %162 : vector<8x128xf32>
    %164 = arith.index_cast %c6_i32 : i32 to index
    %c0_83 = arith.constant 0 : index
    %c0_84 = arith.constant 0 : index
    %165 = vector.load %arg7[%164, %c0_83, %c0_84] : memref<8x8x128xf32, #tpu.memory_space<vmem>>, vector<1x8x128xf32>
    %166 = vector.shape_cast %165 : vector<1x8x128xf32> to vector<8x128xf32>
    %167 = vector.shape_cast %163 : vector<8x128xf32> to vector<1x8x128xf32>
    tpu.vector_store %arg7[%164, %c0_83, %c0_84], %167 {strides = array<i32>} : memref<8x8x128xf32, #tpu.memory_space<vmem>>, vector<1x8x128xf32>,
    %c7_i32 = arith.constant 7 : i32
    %168 = arith.truncf %163 : vector<8x128xf32> to vector<8x128xbf16>
    %cst_85 = arith.constant dense<0.000000e+00> : vector<8x128xf32>
    %169 = tpu.matmul %168, %12, %cst_85 {dimension_numbers = #tpu.dot_dimension_numbers<[1], [0], [0], [1], [0, 0, 1, 1], [], []>} : vector<8x128xbf16>, vector<128x128xbf16>, vector<8x128xf32> -> vector<8x128xf32>
    %170 = arith.index_cast %c7_i32 : i32 to index
    %c0_86 = arith.constant 0 : index
    %c0_87 = arith.constant 0 : index
    %171 = vector.load %arg9[%170, %c0_86, %c0_87] : memref<8x8x128xf32, #tpu.memory_space<vmem>>, vector<1x8x128xf32>
    %172 = vector.shape_cast %171 : vector<1x8x128xf32> to vector<8x128xf32>
    %173 = arith.addf %169, %172 : vector<8x128xf32>
    %cst_88 = arith.constant 8.000000e-01 : f32
    %174 = vector.broadcast %cst_88 : f32 to vector<8x128xf32>
    %175 = arith.mulf %163, %174 : vector<8x128xf32>
    %cst_89 = arith.constant 5.000000e-01 : f32
    %176 = vector.broadcast %cst_89 : f32 to vector<8x128xf32>
    %177 = arith.mulf %176, %173 : vector<8x128xf32>
    %178 = math.tanh %177 : vector<8x128xf32>
    %cst_90 = arith.constant 1.000000e+00 : f32
    %179 = vector.broadcast %cst_90 : f32 to vector<8x128xf32>
    %180 = arith.addf %178, %179 : vector<8x128xf32>
    %cst_91 = arith.constant 5.000000e-01 : f32
    %181 = vector.broadcast %cst_91 : f32 to vector<8x128xf32>
    %182 = arith.mulf %181, %180 : vector<8x128xf32>
    %cst_92 = arith.constant 2.000000e-01 : f32
    %183 = vector.broadcast %cst_92 : f32 to vector<8x128xf32>
    %184 = arith.mulf %183, %182 : vector<8x128xf32>
    %185 = arith.addf %175, %184 : vector<8x128xf32>
    %186 = arith.index_cast %c7_i32 : i32 to index
    %c0_93 = arith.constant 0 : index
    %c0_94 = arith.constant 0 : index
    %187 = vector.load %arg7[%186, %c0_93, %c0_94] : memref<8x8x128xf32, #tpu.memory_space<vmem>>, vector<1x8x128xf32>
    %188 = vector.shape_cast %187 : vector<1x8x128xf32> to vector<8x128xf32>
    %189 = vector.shape_cast %185 : vector<8x128xf32> to vector<1x8x128xf32>
    tpu.vector_store %arg7[%186, %c0_93, %c0_94], %189 {strides = array<i32>} : memref<8x8x128xf32, #tpu.memory_space<vmem>>, vector<1x8x128xf32>,
    %c8_i32 = arith.constant 8 : i32
    %c0_95 = arith.constant 0 : index
    %c0_96 = arith.constant 0 : index
    %190 = vector.load %arg8[%c0_95, %c0_96] : memref<8x128xf32, #tpu.memory_space<vmem>>, vector<8x128xf32>
    tpu.vector_store %arg8[%c0_95, %c0_96], %185 {strides = array<i32>} : memref<8x128xf32, #tpu.memory_space<vmem>>, vector<8x128xf32>,
    return
  }
  func.func @transform_0(%arg0: i32, %arg1: i32) -> (i32, i32, i32) {
    %c0_i32 = arith.constant 0 : i32
    %c0_i32_0 = arith.constant 0 : i32
    return %arg1, %arg0, %c0_i32 : i32, i32, i32
  }
  func.func @transform_1(%arg0: i32, %arg1: i32) -> (i32, i32) {
    %c0_i32 = arith.constant 0 : i32
    %c0_i32_0 = arith.constant 0 : i32
    %c0_i32_1 = arith.constant 0 : i32
    return %c0_i32, %c0_i32_0 : i32, i32
  }
  func.func @transform_2(%arg0: i32, %arg1: i32) -> (i32, i32) {
    %c0_i32 = arith.constant 0 : i32
    %c0_i32_0 = arith.constant 0 : i32
    %c0_i32_1 = arith.constant 0 : i32
    return %c0_i32, %c0_i32_0 : i32, i32
  }
  func.func @transform_3(%arg0: i32, %arg1: i32) -> (i32, i32) {
    %c0_i32 = arith.constant 0 : i32
    %c0_i32_0 = arith.constant 0 : i32
    %c0_i32_1 = arith.constant 0 : i32
    return %c0_i32, %c0_i32_0 : i32, i32
  }
  func.func @transform_4(%arg0: i32, %arg1: i32) -> (i32, i32) {
    %c0_i32 = arith.constant 0 : i32
    %c0_i32_0 = arith.constant 0 : i32
    return %arg0, %c0_i32 : i32, i32
  }
  func.func @transform_5(%arg0: i32, %arg1: i32) -> (i32, i32, i32) {
    %c0_i32 = arith.constant 0 : i32
    %c0_i32_0 = arith.constant 0 : i32
    return %arg1, %arg0, %c0_i32 : i32, i32, i32
  }
}

</mosaic_0001>

<bundles_post_ra>
// kernel: tpu_custom_call.1
= control target key start
LH: loop header
LB: loop body
LE: loop exit
PB: predicated region body
PF: predicated region fallthrough
CT: control target
= control target key end

     0   :  { %10 = vsyncpa [#allocation5], 0  ;;  %s1447_s0 = inlined_call_operand.hbm [shape: bf16[8,8,128], index: 0, kind: input, shape index: {}]   ;;  %s1448_s1 = inlined_call_operand.hbm [shape: bf16[128,128], index: 1, kind: input, shape index: {}]   ;;  %s1449_s2 = inlined_call_operand.vmem [shape: f32[1,128], index: 2, kind: input, shape index: {}]   ;;  %s1450_s3 = inlined_call_operand.hbm [shape: bf16[128,128], index: 3, kind: input, shape index: {}]   ;;  %s1451_s4 = inlined_call_operand.hbm [shape: f32[8,128], index: 4, kind: input, shape index: {}]   ;;  %s1452_s5 = inlined_call_operand.hbm [shape: f32[8,8,128], index: 5, kind: output, shape index: {}]  }
   0x1   :  { %11 = vsyncpa [#allocation8], 0 }
   0x2   :  { %12 = vsyncpa [#allocation11], 0 }
   0x3   :  { %13 = vsyncpa [#allocation6], 0  ;;  %s1200_s18 = smov [#allocation7]   ;;  %s1201_s20 = smov [#allocation4]  }
   0x4   :  { %s31_s19 = sshll.u32 %s1200_s18, 4  ;;  %s19_s21 = sshll.u32 %s1201_s20, 4  ;;  %s32_s19 = int_to_ptr.vmem [resolvable:$true] %s31_s19  ;;  %s20_s21 = int_to_ptr.vmem [resolvable:$true] %s19_s21 }
   0x5   :  { %s1100_s22 = scalar_lea.vmem %s32_s19, 1024  ;;  %p1105_p1 = scmp.lt.s32.totalorder %s32_s19, %s32_s19 }
   0x6   :  { %p1101_p0 = scmp.ne.s32.totalorder %s32_s19, %s1100_s22  ;;  %p1106_p2 = scmp.lt.s32.totalorder %s1100_s22, %s1100_s22 }
   0x8   :  { %p1107_p3 = por %p1106_p2, %p1105_p1 }
   0xa   :  { %p1108_p4 = pnand %p1107_p3, %p1101_p0 }
   0xc   :  { %1111 = shalt.err (!%p1108_p4)
}
   0xd   :  { %s1202_s23 = smov 64   ;;  %s1203_s24 = smov 4  }
   0xe   :  { %37 = dma.hbm_to_vmem [thread:$0]  %s1448_s1, 1024, %s32_s19, [#allocation8], %s1202_s23, %s1202_s23, %s1203_s24  }
   0xf   :  { %s1120_s27 = scalar_lea.vmem %s20_s21, 512  ;;  %p1125_p6 = scmp.lt.s32.totalorder %s20_s21, %s20_s21 }
  0x10   :  { %p1121_p5 = scmp.ne.s32.totalorder %s20_s21, %s1120_s27  ;;  %p1126_p7 = scmp.lt.s32.totalorder %s1120_s27, %s1120_s27 }
  0x12   :  { %p1127_p8 = por %p1126_p7, %p1125_p6 }
  0x14   :  { %p1128_p9 = pnand %p1127_p8, %p1121_p5 }
  0x16   :  { %1131 = shalt.err (!%p1128_p9)
}
  0x17   :  { %25 = dma.hbm_to_vmem [thread:$0]  %s1447_s0, 512, %s20_s21, [#allocation5], %s1202_s23, %s1202_s23, %s1203_s24  }
  0x18   :  { %s1204_s30 = smov [#allocation9]   ;;  %s1205_s7 = smov [#allocation10]  }
  0x19   :  { %s45_s6 = sshll.u32 %s1204_s30, 4  ;;  %s58_s8 = sshll.u32 %s1205_s7, 4  ;;  %s46_s6 = int_to_ptr.vmem [resolvable:$true] %s45_s6  ;;  %s59_s8 = int_to_ptr.vmem [resolvable:$true] %s58_s8 }
  0x1a   :  { %s1140_s9 = scalar_lea.vmem %s46_s6, 1024  ;;  %p1145_p11 = scmp.lt.s32.totalorder %s46_s6, %s46_s6 }
  0x1b   :  { %p1141_p10 = scmp.ne.s32.totalorder %s46_s6, %s1140_s9  ;;  %p1146_p12 = scmp.lt.s32.totalorder %s1140_s9, %s1140_s9 }
  0x1d   :  { %p1147_p13 = por %p1146_p12, %p1145_p11 }
  0x1f   :  { %p1148_p0 = pnand %p1147_p13, %p1141_p10 }
  0x21   :  { %1151 = shalt.err (!%p1148_p0)
}
  0x22   :  { %51 = dma.hbm_to_vmem [thread:$0]  %s1450_s3, 1024, %s46_s6, [#allocation8], %s1202_s23, %s1202_s23, %s1203_s24  }
  0x23   :  { %s1160_s11 = scalar_lea.vmem %s59_s8, 128  ;;  %p1165_p2 = scmp.lt.s32.totalorder %s59_s8, %s59_s8 }
  0x24   :  { %p1161_p1 = scmp.ne.s32.totalorder %s59_s8, %s1160_s11  ;;  %p1166_p3 = scmp.lt.s32.totalorder %s1160_s11, %s1160_s11 }
  0x26   :  { %p1167_p4 = por %p1166_p3, %p1165_p2 }
  0x28   :  { %p1168_p5 = pnand %p1167_p4, %p1161_p1 }
  0x2a   :  { %1171 = shalt.err (!%p1168_p5)
}
  0x2b   :  { %61 = dma.hbm_to_vmem [thread:$0]  %s1451_s4, 128, %s59_s8, [#allocation11]  }
  0x2c   :  { %1192 = dma.done.wait [#allocation5], 512  }
  0x2d   :  { %1193 = vsyncadd [#allocation5], 4294966784 }
  0x2e   :  { %1194 = dma.done.wait [#allocation8], 2048  }
  0x2f   :  { %1195 = vsyncadd [#allocation8], 4294965248 }
  0x30   :  { %1196 = dma.done.wait [#allocation11], 128  }
  0x31   :  { %1197 = vsyncadd [#allocation11], 4294967168  ;;  %v1206_v0 = vmov 0.0   ;;  %vm1207_vm0 = vmmov 0   ;;  %v1056_v1 = vld [vmem:[#allocation7 + $0x38] sm:$0xff]   ;;  %v1058_v3 = vld [vmem:[#allocation7 + $0x30] sm:$0xff]  }
  0x32   :  { %885 = vmatprep.subr.bf16.mxu1 %v1206_v0  ;;  %901 = vmatprep.mubr.msk.bf16.mxu1 %vm1207_vm0, %v1206_v0  ;;  %v1256_v2 = vld [vmem:[#allocation9 + $0x38] sm:$0xff]   ;;  %v1259_v4 = vld [vmem:[#allocation9 + $0x30] sm:$0xff]   ;;  %v1060_v5 = vld [vmem:[#allocation7 + $0x28] sm:$0xff]  }
  0x33   :  { %861 = vmatprep.subr.bf16.mxu0 %v1056_v1  ;;  %886 = vmatpush3.bf16.msra.mxu1 %v1256_v2  ;;  %v1263_v6 = vld [vmem:[#allocation9 + $0x28] sm:$0xff]   ;;  %v1062_v7 = vld [vmem:[#allocation7 + $0x20] sm:$0xff]   ;;  %v1064_v9 = vld [vmem:[#allocation7 + $0x18] sm:$0xff]  }
  0x34   :  { %862 = vmatpush3.bf16.msra.mxu0 %v1056_v1  ;;  %887 = vmatprep.subr.bf16.mxu1 %v1206_v0  ;;  %v1267_v8 = vld [vmem:[#allocation9 + $0x20] sm:$0xff]   ;;  %v1270_v10 = vld [vmem:[#allocation9 + $0x18] sm:$0xff]   ;;  %v1066_v11 = vld [vmem:[#allocation7 + $0x10] sm:$0xff]  }
  0x35   :  { %863 = vmatprep.subr.bf16.mxu0 %v1058_v3  ;;  %v1072_v12 = vld [vmem:[#allocation4] sm:$0xff]   ;;  %v1274_v13 = vld [vmem:[#allocation9 + $0x10] sm:$0xff]   ;;  %v1068_v14 = vld [vmem:[#allocation7 + $0x8] sm:$0xff]  }
  0x36   :  { %877 = vmatprep.mubr.bf16.mxu0 %v1072_v12  ;;  %v1279_v15 = vld [vmem:[#allocation9 + $0x8] sm:$0xff]   ;;  %v1070_v16 = vld [vmem:[#allocation7] sm:$0xff]   ;;  %v1074_v21 = vld [vmem:[#allocation4 + $0x10] sm:$0xff]  }
  0x37   :  { %888 = vmatpush3.bf16.msra.mxu1 %v1259_v4  ;;  %v1283_v17 = vld [vmem:[#allocation9] sm:$0xff]   ;;  %v1073_v20 = vld [vmem:[#allocation4 + $0x8] sm:$0xff]   ;;  %v1075_v22 = vld [vmem:[#allocation4 + $0x18] sm:$0xff]  }
  0x38   :  { %864 = vmatpush3.bf16.msra.mxu0 %v1058_v3  ;;  %889 = vmatprep.subr.bf16.mxu1 %v1206_v0  ;;  %v79_v18 = vld [vmem:[#allocation10] sm:$0xff] }
  0x39   :  { %865 = vmatprep.subr.bf16.mxu0 %v1060_v5  ;;  %v274_v19 = vpack.c.bf16 %v79_v18, %v79_v18  ;;  %v1330_v25 = vld [vmem:[%s1449_s2] ss:$0 sm:$0xff]  ;;  %v364_v35 = vmul.f32 0.8, %v79_v18  ;;  %s1208_s2 = smov [#allocation12]  }
  0x3a   :  { %s742_s13 = sshll.u32 %s1208_s2, 4  ;;  %s743_s13 = int_to_ptr.vmem [resolvable:$true] %s742_s13 }
  0x3b   :  { %890 = vmatpush3.bf16.msra.mxu1 %v1263_v6  ;;  %s1172_s14 = scalar_lea.vmem %s743_s13, 1024  ;;  %p1177_p7 = scmp.lt.s32.totalorder %s743_s13, %s743_s13 }
  0x3c   :  { %866 = vmatpush3.bf16.msra.mxu0 %v1060_v5  ;;  %891 = vmatprep.subr.bf16.mxu1 %v1206_v0  ;;  %p1173_p6 = scmp.ne.s32.totalorder %s743_s13, %s1172_s14  ;;  %p1178_p8 = scmp.lt.s32.totalorder %s1172_s14, %s1172_s14 }
  0x3d   :  { %867 = vmatprep.subr.bf16.mxu0 %v1062_v7 }
  0x3e   :  { %p1179_p9 = por %p1178_p8, %p1177_p7 }
  0x3f   :  { %892 = vmatpush3.bf16.msra.mxu1 %v1267_v8 }
  0x40   :  { %868 = vmatpush3.bf16.msra.mxu0 %v1062_v7  ;;  %893 = vmatprep.subr.bf16.mxu1 %v1206_v0  ;;  %p1180_p10 = pnand %p1179_p9, %p1173_p6 }
  0x41   :  { %869 = vmatprep.subr.bf16.mxu0 %v1064_v9 }
  0x43   :  { %894 = vmatpush3.bf16.msra.mxu1 %v1270_v10 }
  0x44   :  { %870 = vmatpush3.bf16.msra.mxu0 %v1064_v9  ;;  %895 = vmatprep.subr.bf16.mxu1 %v1206_v0 }
  0x45   :  { %871 = vmatprep.subr.bf16.mxu0 %v1066_v11 }
  0x47   :  { %896 = vmatpush3.bf16.msra.mxu1 %v1274_v13 }
  0x48   :  { %872 = vmatpush3.bf16.msra.mxu0 %v1066_v11  ;;  %897 = vmatprep.subr.bf16.mxu1 %v1206_v0 }
  0x49   :  { %873 = vmatprep.subr.bf16.mxu0 %v1068_v14 }
  0x4b   :  { %898 = vmatpush3.bf16.msra.mxu1 %v1279_v15 }
  0x4c   :  { %874 = vmatpush3.bf16.msra.mxu0 %v1068_v14  ;;  %899 = vmatprep.subr.bf16.mxu1 %v1206_v0 }
  0x4d   :  { %875 = vmatprep.subr.bf16.mxu0 %v1070_v16 }
  0x4f   :  { %900 = vmatpush3.bf16.msra.mxu1 %v1283_v17 }
  0x50   :  { %876 = vmatpush3.bf16.msra.mxu0 %v1070_v16  ;;  %925 = vmatprep.subr.bf16.mxu1 %v1206_v0 }
  0x51   :  { %905 = vmatprep.subr.bf16.mxu0 %v1206_v0 }
  0x52   :  { %902 = vmatmul.mubr.bf16.vlgmr.msra.gmra.mxu1 %v274_v19 }
  0x53   :  { %878 = vmatmul.mubr.bf16.vlgmr.msra.gmra.mxu0 %v1073_v20  ;;  %926 = vmatpush3.bf16.msra.mxu1 %v1256_v2 }
  0x54   :  { %906 = vmatpush3.bf16.msra.mxu0 %v1256_v2  ;;  %927 = vmatprep.subr.bf16.mxu1 %v1206_v0 }
  0x55   :  { %907 = vmatprep.subr.bf16.mxu0 %v1206_v0  ;;  %941 = vmatprep.mubr.msk.bf16.mxu1 %vm1207_vm0, %v1206_v0 }
  0x56   :  { %881 = vmatprep.mubr.bf16.mxu0 %v1074_v21 }
  0x57   :  { %928 = vmatpush3.bf16.msra.mxu1 %v1259_v4 }
  0x58   :  { %908 = vmatpush3.bf16.msra.mxu0 %v1259_v4  ;;  %929 = vmatprep.subr.bf16.mxu1 %v1206_v0 }
  0x59   :  { %909 = vmatprep.subr.bf16.mxu0 %v1206_v0 }
  0x5b   :  { %930 = vmatpush3.bf16.msra.mxu1 %v1263_v6  ;;  %882 = vmatmul.mubr.bf16.gmra.mxu0 %v1075_v22 }
  0x5c   :  { %910 = vmatpush3.bf16.msra.mxu0 %v1263_v6  ;;  %931 = vmatprep.subr.bf16.mxu1 %v1206_v0 }
  0x5d   :  { %911 = vmatprep.subr.bf16.mxu0 %v1206_v0  ;;  %921 = vmatprep.mubr.msk.bf16.mxu0 %vm1207_vm0, %v1206_v0 }
  0x5f   :  { %932 = vmatpush3.bf16.msra.mxu1 %v1267_v8 }
  0x60   :  { %912 = vmatpush3.bf16.msra.mxu0 %v1267_v8  ;;  %933 = vmatprep.subr.bf16.mxu1 %v1206_v0 }
  0x61   :  { %913 = vmatprep.subr.bf16.mxu0 %v1206_v0 }
  0x63   :  { %934 = vmatpush3.bf16.msra.mxu1 %v1270_v10 }
  0x64   :  { %914 = vmatpush3.bf16.msra.mxu0 %v1270_v10  ;;  %935 = vmatprep.subr.bf16.mxu1 %v1206_v0 }
  0x65   :  { %915 = vmatprep.subr.bf16.mxu0 %v1206_v0 }
  0x67   :  { %936 = vmatpush3.bf16.msra.mxu1 %v1274_v13 }
  0x68   :  { %916 = vmatpush3.bf16.msra.mxu0 %v1274_v13  ;;  %937 = vmatprep.subr.bf16.mxu1 %v1206_v0 }
  0x69   :  { %917 = vmatprep.subr.bf16.mxu0 %v1206_v0 }
  0x6b   :  { %938 = vmatpush3.bf16.msra.mxu1 %v1279_v15 }
  0x6c   :  { %918 = vmatpush3.bf16.msra.mxu0 %v1279_v15  ;;  %939 = vmatprep.subr.bf16.mxu1 %v1206_v0 }
  0x6d   :  { %919 = vmatprep.subr.bf16.mxu0 %v1206_v0 }
  0x6f   :  { %940 = vmatpush3.bf16.msra.mxu1 %v1283_v17 }
  0x70   :  { %920 = vmatpush3.bf16.msra.mxu0 %v1283_v17  ;;  %965 = vmatprep.subr.bf16.mxu1 %v1206_v0 }
  0x71   :  { %945 = vmatprep.subr.bf16.mxu0 %v1206_v0 }
 0x112   :  { %v358_v23 = vpop.f32.mrf.mxu1 }
 0x113   :  { %v1325_v24 = vpop.f32.mrf.mxu0 }
 0x114   :  { %v903_v26 = vpop.f32.mrf.mxu1  ;;  %v227_v60 = vadd.f32 %v1325_v24, %v1330_v25 }
 0x115   :  { %v218_v27 = vpop.f32.mrf.mxu0 }
 0x116   :  { %v219_v28 = vadd.f32 %v1330_v25, %v218_v27  ;;  %v361_v29 = vpop.f32.mrf.mxu1 }
 0x117   :  { %v1351_v40 = vpop.f32.mrf.mxu0 }
 0x118   :  { %v359_v30 = vadd.f32 %v358_v23, %v219_v28  ;;  %v904_v31 = vpop.f32.mrf.mxu1  ;;  %v230_v19 = vadd.f32 %v1351_v40, %v1330_v25 }
 0x119   :  { %v221_v41 = vpop.f32.mrf.mxu0 }
 0x11a   :  { %v365_v32 = vmul.f32 0.5, %v359_v30  ;;  %v222_v46 = vadd.f32 %v1330_v25, %v221_v41 }
 0x11b   :  { %v1353_v42 = vpop.f32.mrf.mxu0 }
 0x11c   :  { %1076 = vtanh.f32 %v365_v32 }
 0x11d   :  { %v1355_v43 = vpop.f32.mrf.mxu0 }
 0x11f   :  { %v1357_v44 = vpop.f32.mrf.mxu0 }
 0x121   :  { %v1359_v45 = vpop.f32.mrf.mxu0 }
 0x129   :  { %v1077_v33 = vpop.eup %1076 }
 0x12a   :  { %v367_v34 = vadd.f32 1.0, %v1077_v33 }
 0x12c   :  { %v368_v36 = vmul.f32 0.5, %v367_v34  ;;  %v235_v34 = vadd.f32 %v1330_v25, %v1355_v43 }
 0x12e   :  { %v369_v37 = vmul.f32 0.2, %v368_v36 }
 0x130   :  { %v370_v38 = vadd.f32 %v369_v37, %v364_v35 }
 0x132   :  { %371 = vst [vmem:[#allocation12] sm:$0xff] %v370_v38  ;;  %v372_v39 = vpack.c.bf16 %v370_v38, %v370_v38  ;;  %v415_v56 = vmul.f32 0.8, %v370_v38 }
 0x134   :  { %922 = vmatmul.mubr.bf16.vlgmr.msra.gmra.mxu0 %v372_v39 }
 0x135   :  { %946 = vmatpush3.bf16.msra.mxu0 %v1256_v2  ;;  %961 = vmatprep.mubr.msk.bf16.mxu0 %vm1207_vm0, %v1206_v0 }
 0x136   :  { %947 = vmatprep.subr.bf16.mxu0 %v1206_v0 }
 0x139   :  { %948 = vmatpush3.bf16.msra.mxu0 %v1259_v4 }
 0x13a   :  { %949 = vmatprep.subr.bf16.mxu0 %v1206_v0 }
 0x13d   :  { %950 = vmatpush3.bf16.msra.mxu0 %v1263_v6 }
 0x13e   :  { %951 = vmatprep.subr.bf16.mxu0 %v1206_v0 }
 0x141   :  { %952 = vmatpush3.bf16.msra.mxu0 %v1267_v8 }
 0x142   :  { %953 = vmatprep.subr.bf16.mxu0 %v1206_v0 }
 0x145   :  { %954 = vmatpush3.bf16.msra.mxu0 %v1270_v10 }
 0x146   :  { %955 = vmatprep.subr.bf16.mxu0 %v1206_v0 }
 0x149   :  { %956 = vmatpush3.bf16.msra.mxu0 %v1274_v13 }
 0x14a   :  { %957 = vmatprep.subr.bf16.mxu0 %v1206_v0 }
 0x14d   :  { %958 = vmatpush3.bf16.msra.mxu0 %v1279_v15 }
 0x14e   :  { %959 = vmatprep.subr.bf16.mxu0 %v1206_v0 }
 0x151   :  { %960 = vmatpush3.bf16.msra.mxu0 %v1283_v17 }
 0x152   :  { %985 = vmatprep.subr.bf16.mxu0 %v1206_v0 }
 0x1f4   :  { %v409_v47 = vpop.f32.mrf.mxu0 }
 0x1f5   :  { %v410_v48 = vadd.f32 %v409_v47, %v222_v46 }
 0x1f6   :  { %v923_v49 = vpop.f32.mrf.mxu0 }
 0x1f7   :  { %v416_v50 = vmul.f32 0.5, %v410_v48 }
 0x1f8   :  { %v412_v51 = vpop.f32.mrf.mxu0 }
 0x1f9   :  { %1078 = vtanh.f32 %v416_v50 }
 0x1fa   :  { %v924_v52 = vpop.f32.mrf.mxu0 }
 0x206   :  { %v1079_v53 = vpop.eup %1078 }
 0x207   :  { %v418_v54 = vadd.f32 1.0, %v1079_v53 }
 0x209   :  { %v419_v55 = vmul.f32 0.5, %v418_v54 }
 0x20b   :  { %v420_v57 = vmul.f32 0.2, %v419_v55 }
 0x20d   :  { %v421_v58 = vadd.f32 %v420_v57, %v415_v56 }
 0x20f   :  { %423 = vst [vmem:[#allocation12 + $0x8] sm:$0xff] %v421_v58  ;;  %v424_v59 = vpack.c.bf16 %v421_v58, %v421_v58  ;;  %v467_v12 = vmul.f32 0.8, %v421_v58 }
 0x211   :  { %942 = vmatmul.mubr.bf16.vlgmr.msra.gmra.mxu1 %v424_v59 }
 0x212   :  { %966 = vmatpush3.bf16.msra.mxu1 %v1256_v2  ;;  %981 = vmatprep.mubr.msk.bf16.mxu1 %vm1207_vm0, %v1206_v0 }
 0x213   :  { %967 = vmatprep.subr.bf16.mxu1 %v1206_v0 }
 0x216   :  { %968 = vmatpush3.bf16.msra.mxu1 %v1259_v4 }
 0x217   :  { %969 = vmatprep.subr.bf16.mxu1 %v1206_v0 }
 0x21a   :  { %970 = vmatpush3.bf16.msra.mxu1 %v1263_v6 }
 0x21b   :  { %971 = vmatprep.subr.bf16.mxu1 %v1206_v0 }
 0x21e   :  { %972 = vmatpush3.bf16.msra.mxu1 %v1267_v8 }
 0x21f   :  { %973 = vmatprep.subr.bf16.mxu1 %v1206_v0 }
 0x222   :  { %974 = vmatpush3.bf16.msra.mxu1 %v1270_v10 }
 0x223   :  { %975 = vmatprep.subr.bf16.mxu1 %v1206_v0 }
 0x226   :  { %976 = vmatpush3.bf16.msra.mxu1 %v1274_v13 }
 0x227   :  { %977 = vmatprep.subr.bf16.mxu1 %v1206_v0 }
 0x22a   :  { %978 = vmatpush3.bf16.msra.mxu1 %v1279_v15 }
 0x22b   :  { %979 = vmatprep.subr.bf16.mxu1 %v1206_v0 }
 0x22e   :  { %980 = vmatpush3.bf16.msra.mxu1 %v1283_v17 }
 0x22f   :  { %1005 = vmatprep.subr.bf16.mxu1 %v1206_v0 }
 0x2d1   :  { %v461_v61 = vpop.f32.mrf.mxu1 }
 0x2d2   :  { %v462_v62 = vadd.f32 %v461_v61, %v227_v60 }
 0x2d3   :  { %v943_v63 = vpop.f32.mrf.mxu1 }
 0x2d4   :  { %v468_v1 = vmul.f32 0.5, %v462_v62 }
 0x2d5   :  { %v464_v3 = vpop.f32.mrf.mxu1 }
 0x2d6   :  { %1080 = vtanh.f32 %v468_v1 }
 0x2d7   :  { %v944_v5 = vpop.f32.mrf.mxu1 }
 0x2e3   :  { %v1081_v7 = vpop.eup %1080 }
 0x2e4   :  { %v470_v9 = vadd.f32 1.0, %v1081_v7 }
 0x2e6   :  { %v471_v11 = vmul.f32 0.5, %v470_v9 }
 0x2e8   :  { %v472_v14 = vmul.f32 0.2, %v471_v11  ;;  %v246_v11 = vadd.f32 %v1357_v44, %v1330_v25 }
 0x2ea   :  { %v473_v16 = vadd.f32 %v472_v14, %v467_v12 }
 0x2ec   :  { %475 = vst [vmem:[#allocation12 + $0x10] sm:$0xff] %v473_v16  ;;  %v476_v18 = vpack.c.bf16 %v473_v16, %v473_v16  ;;  %v519_v30 = vmul.f32 0.8, %v473_v16 }
 0x2ee   :  { %962 = vmatmul.mubr.bf16.vlgmr.msra.gmra.mxu0 %v476_v18 }
 0x2ef   :  { %986 = vmatpush3.bf16.msra.mxu0 %v1256_v2  ;;  %1001 = vmatprep.mubr.msk.bf16.mxu0 %vm1207_vm0, %v1206_v0 }
 0x2f0   :  { %987 = vmatprep.subr.bf16.mxu0 %v1206_v0 }
 0x2f3   :  { %988 = vmatpush3.bf16.msra.mxu0 %v1259_v4 }
 0x2f4   :  { %989 = vmatprep.subr.bf16.mxu0 %v1206_v0 }
 0x2f7   :  { %990 = vmatpush3.bf16.msra.mxu0 %v1263_v6 }
 0x2f8   :  { %991 = vmatprep.subr.bf16.mxu0 %v1206_v0 }
 0x2fb   :  { %992 = vmatpush3.bf16.msra.mxu0 %v1267_v8 }
 0x2fc   :  { %993 = vmatprep.subr.bf16.mxu0 %v1206_v0 }
 0x2ff   :  { %994 = vmatpush3.bf16.msra.mxu0 %v1270_v10 }
 0x300   :  { %995 = vmatprep.subr.bf16.mxu0 %v1206_v0 }
 0x303   :  { %996 = vmatpush3.bf16.msra.mxu0 %v1274_v13 }
 0x304   :  { %997 = vmatprep.subr.bf16.mxu0 %v1206_v0 }
 0x307   :  { %998 = vmatpush3.bf16.msra.mxu0 %v1279_v15 }
 0x308   :  { %999 = vmatprep.subr.bf16.mxu0 %v1206_v0 }
 0x30b   :  { %1000 = vmatpush3.bf16.msra.mxu0 %v1283_v17 }
 0x30c   :  { %1025 = vmatprep.subr.bf16.mxu0 %v1206_v0 }
 0x3ae   :  { %v513_v20 = vpop.f32.mrf.mxu0 }
 0x3af   :  { %v514_v21 = vadd.f32 %v513_v20, %v230_v19 }
 0x3b0   :  { %v963_v22 = vpop.f32.mrf.mxu0 }
 0x3b1   :  { %v520_v23 = vmul.f32 0.5, %v514_v21 }
 0x3b2   :  { %v516_v24 = vpop.f32.mrf.mxu0 }
 0x3b3   :  { %1082 = vtanh.f32 %v520_v23 }
 0x3b4   :  { %v964_v26 = vpop.f32.mrf.mxu0 }
 0x3c0   :  { %v1083_v27 = vpop.eup %1082 }
 0x3c1   :  { %v522_v28 = vadd.f32 1.0, %v1083_v27 }
 0x3c3   :  { %v523_v29 = vmul.f32 0.5, %v522_v28 }
 0x3c5   :  { %v524_v31 = vmul.f32 0.2, %v523_v29 }
 0x3c7   :  { %v525_v32 = vadd.f32 %v524_v31, %v519_v30 }
 0x3c9   :  { %527 = vst [vmem:[#allocation12 + $0x18] sm:$0xff] %v525_v32  ;;  %v528_v33 = vpack.c.bf16 %v525_v32, %v525_v32  ;;  %v571_v48 = vmul.f32 0.8, %v525_v32 }
 0x3cb   :  { %982 = vmatmul.mubr.bf16.vlgmr.msra.gmra.mxu1 %v528_v33 }
 0x3cc   :  { %1006 = vmatpush3.bf16.msra.mxu1 %v1256_v2  ;;  %1021 = vmatprep.mubr.msk.bf16.mxu1 %vm1207_vm0, %v1206_v0 }
 0x3cd   :  { %1007 = vmatprep.subr.bf16.mxu1 %v1206_v0 }
 0x3d0   :  { %1008 = vmatpush3.bf16.msra.mxu1 %v1259_v4 }
 0x3d1   :  { %1009 = vmatprep.subr.bf16.mxu1 %v1206_v0 }
 0x3d4   :  { %1010 = vmatpush3.bf16.msra.mxu1 %v1263_v6 }
 0x3d5   :  { %1011 = vmatprep.subr.bf16.mxu1 %v1206_v0 }
 0x3d8   :  { %1012 = vmatpush3.bf16.msra.mxu1 %v1267_v8 }
 0x3d9   :  { %1013 = vmatprep.subr.bf16.mxu1 %v1206_v0 }
 0x3dc   :  { %1014 = vmatpush3.bf16.msra.mxu1 %v1270_v10 }
 0x3dd   :  { %1015 = vmatprep.subr.bf16.mxu1 %v1206_v0 }
 0x3e0   :  { %1016 = vmatpush3.bf16.msra.mxu1 %v1274_v13 }
 0x3e1   :  { %1017 = vmatprep.subr.bf16.mxu1 %v1206_v0 }
 0x3e4   :  { %1018 = vmatpush3.bf16.msra.mxu1 %v1279_v15 }
 0x3e5   :  { %1019 = vmatprep.subr.bf16.mxu1 %v1206_v0 }
 0x3e8   :  { %1020 = vmatpush3.bf16.msra.mxu1 %v1283_v17 }
 0x48b   :  { %v565_v35 = vpop.f32.mrf.mxu1 }
 0x48c   :  { %v566_v36 = vadd.f32 %v565_v35, %v235_v34 }
 0x48d   :  { %v983_v37 = vpop.f32.mrf.mxu1 }
 0x48e   :  { %v572_v38 = vmul.f32 0.5, %v566_v36 }
 0x48f   :  { %v568_v39 = vpop.f32.mrf.mxu1 }
 0x490   :  { %1084 = vtanh.f32 %v572_v38 }
 0x491   :  { %v984_v40 = vpop.f32.mrf.mxu1 }
 0x49d   :  { %v1085_v41 = vpop.eup %1084 }
 0x49e   :  { %v574_v46 = vadd.f32 1.0, %v1085_v41 }
 0x4a0   :  { %v575_v47 = vmul.f32 0.5, %v574_v46 }
 0x4a2   :  { %v576_v49 = vmul.f32 0.2, %v575_v47 }
 0x4a4   :  { %v577_v50 = vadd.f32 %v576_v49, %v571_v48 }
 0x4a6   :  { %579 = vst [vmem:[#allocation12 + $0x20] sm:$0xff] %v577_v50  ;;  %v580_v51 = vpack.c.bf16 %v577_v50, %v577_v50  ;;  %v623_v55 = vmul.f32 0.8, %v577_v50 }
 0x4a8   :  { %1002 = vmatmul.mubr.bf16.vlgmr.msra.gmra.mxu0 %v580_v51 }
 0x4a9   :  { %1026 = vmatpush3.bf16.msra.mxu0 %v1256_v2  ;;  %1041 = vmatprep.mubr.msk.bf16.mxu0 %vm1207_vm0, %v1206_v0  ;;  %v238_v2 = vadd.f32 %v1330_v25, %v1359_v45 }
 0x4aa   :  { %1027 = vmatprep.subr.bf16.mxu0 %v1206_v0 }
 0x4ad   :  { %1028 = vmatpush3.bf16.msra.mxu0 %v1259_v4 }
 0x4ae   :  { %1029 = vmatprep.subr.bf16.mxu0 %v1206_v0 }
 0x4b1   :  { %1030 = vmatpush3.bf16.msra.mxu0 %v1263_v6 }
 0x4b2   :  { %1031 = vmatprep.subr.bf16.mxu0 %v1206_v0 }
 0x4b5   :  { %1032 = vmatpush3.bf16.msra.mxu0 %v1267_v8 }
 0x4b6   :  { %1033 = vmatprep.subr.bf16.mxu0 %v1206_v0 }
 0x4b9   :  { %1034 = vmatpush3.bf16.msra.mxu0 %v1270_v10 }
 0x4ba   :  { %1035 = vmatprep.subr.bf16.mxu0 %v1206_v0 }
 0x4bd   :  { %1036 = vmatpush3.bf16.msra.mxu0 %v1274_v13 }
 0x4be   :  { %1037 = vmatprep.subr.bf16.mxu0 %v1206_v0 }
 0x4c1   :  { %1038 = vmatpush3.bf16.msra.mxu0 %v1279_v15 }
 0x4c2   :  { %1039 = vmatprep.subr.bf16.mxu0 %v1206_v0 }
 0x4c5   :  { %1040 = vmatpush3.bf16.msra.mxu0 %v1283_v17  ;;  %v243_v17 = vadd.f32 %v1353_v42, %v1330_v25 }
 0x568   :  { %v617_v4 = vpop.f32.mrf.mxu0 }
 0x569   :  { %v618_v6 = vadd.f32 %v617_v4, %v238_v2 }
 0x56a   :  { %v1003_v8 = vpop.f32.mrf.mxu0 }
 0x56b   :  { %v624_v43 = vmul.f32 0.5, %v618_v6 }
 0x56c   :  { %v620_v10 = vpop.f32.mrf.mxu0 }
 0x56d   :  { %1086 = vtanh.f32 %v624_v43 }
 0x56e   :  { %v1004_v52 = vpop.f32.mrf.mxu0 }
 0x57a   :  { %v1087_v53 = vpop.eup %1086 }
 0x57b   :  { %v626_v13 = vadd.f32 1.0, %v1087_v53 }
 0x57d   :  { %v627_v54 = vmul.f32 0.5, %v626_v13 }
 0x57f   :  { %v628_v56 = vmul.f32 0.2, %v627_v54 }
 0x581   :  { %v629_v15 = vadd.f32 %v628_v56, %v623_v55 }
 0x583   :  { %631 = vst [vmem:[#allocation12 + $0x28] sm:$0xff] %v629_v15  ;;  %v632_v0 = vpack.c.bf16 %v629_v15, %v629_v15  ;;  %v675_v3 = vmul.f32 0.8, %v629_v15 }
 0x585   :  { %1022 = vmatmul.mubr.bf16.vlgmr.msra.gmra.mxu1 %v632_v0 }
 0x645   :  { %v669_v45 = vpop.f32.mrf.mxu1 }
 0x646   :  { %v670_v57 = vadd.f32 %v669_v45, %v243_v17 }
 0x647   :  { %v1023_v58 = vpop.f32.mrf.mxu1 }
 0x648   :  { %v676_v59 = vmul.f32 0.5, %v670_v57 }
 0x649   :  { %v672_v60 = vpop.f32.mrf.mxu1 }
 0x64a   :  { %1088 = vtanh.f32 %v676_v59 }
 0x64b   :  { %v1024_v61 = vpop.f32.mrf.mxu1 }
 0x657   :  { %v1089_v62 = vpop.eup %1088 }
 0x658   :  { %v678_v63 = vadd.f32 1.0, %v1089_v62 }
 0x65a   :  { %v679_v1 = vmul.f32 0.5, %v678_v63 }
 0x65c   :  { %v680_v5 = vmul.f32 0.2, %v679_v1 }
 0x65e   :  { %v681_v7 = vadd.f32 %v680_v5, %v675_v3 }
 0x660   :  { %683 = vst [vmem:[#allocation12 + $0x30] sm:$0xff] %v681_v7  ;;  %v684_v9 = vpack.c.bf16 %v681_v7, %v681_v7  ;;  %v727_v23 = vmul.f32 0.8, %v681_v7 }
 0x662   :  { %1042 = vmatmul.mubr.bf16.vlgmr.msra.gmra.mxu0 %v684_v9 }
 0x722   :  { %v721_v42 = vpop.f32.mrf.mxu0 }
 0x723   :  { %v722_v12 = vadd.f32 %v721_v42, %v246_v11 }
 0x724   :  { %v1043_v14 = vpop.f32.mrf.mxu0 }
 0x725   :  { %v728_v16 = vmul.f32 0.5, %v722_v12 }
 0x726   :  { %v724_v18 = vpop.f32.mrf.mxu0 }
 0x727   :  { %1090 = vtanh.f32 %v728_v16 }
 0x728   :  { %v1044_v19 = vpop.f32.mrf.mxu0 }
 0x734   :  { %v1091_v20 = vpop.eup %1090 }
 0x735   :  { %v730_v21 = vadd.f32 1.0, %v1091_v20 }
 0x737   :  { %v731_v22 = vmul.f32 0.5, %v730_v21 }
 0x739   :  { %v732_v24 = vmul.f32 0.2, %v731_v22 }
 0x73b   :  { %v733_v26 = vadd.f32 %v732_v24, %v727_v23 }
 0x73d   :  { %735 = vst [vmem:[#allocation12 + $0x38] sm:$0xff] %v733_v26 }
 0x73e   :  { %1183 = shalt.err (!%p1180_p10)
}
 0x73f   :  { %s1209_s15 = smov 128   ;;  %s1210_s16 = smov 8  }
 0x740   :  { %748 = dma.vmem_to_hbm [thread:$0]  %s743_s13, 1024, %s1452_s5, [#allocation6], %s1209_s15, %s1209_s15, %s1210_s16  }
 0x741   :  { %1198 = dma.done.wait [#allocation6], 1024  }
 0x742   :  { %1199 = vsyncadd [#allocation6], 4294966272 }
 0x743   :  { %752 = vsyncpa [#allocation5], 1 }
 0x744   :  { %753 = vsyncpa [#allocation8], 1 }
 0x745   :  { %754 = vsyncpa [#allocation11], 1 }
 0x746   :  { %755 = vsyncpa [#allocation6], 1 }

</bundles_post_ra>
